<compile_context>
chip_gen: v7x
topology: tpu7x:2x2x1
jax: 0.10.0
libtpu: 0.0.40
codegen_flags: <defaults>
</compile_context>

<pallas_src>
import jax
import jax.numpy as jnp
from jax.experimental import pallas as pl
from jax.experimental.pallas import tpu as pltpu

LANE = 128


def mlp_kernel(x_ref, w1_ref, b1_ref, w2_ref, b2_ref, o_ref):
    # fc1: bf16 x bf16 -> f32 accumulation on the MXU.
    h = jnp.dot(x_ref[...], w1_ref[...], preferred_element_type=jnp.float32)
    # Bias-add + ReLU in f32 on the VPU (padded bias lanes are exactly 0).
    h = jnp.maximum(h + b1_ref[...], 0.0)
    # fc2: cast the activation to bf16 only at the MXU input.
    y = jnp.dot(h.astype(jnp.bfloat16), w2_ref[...],
                preferred_element_type=jnp.float32)
    o_ref[...] = (y + b2_ref[...]).astype(o_ref.dtype)


def _round_up(n, m):
    return ((n + m - 1) // m) * m


def simple_mlp_forward(x, w1, b1, w2, b2, *, block_batch=512):
    """x: (B, D) f32; w1: (D, H); b1: (H,); w2: (H, C); b2: (C,) -> (B, C) f32.

    Weights are stored (in_features, out_features). Hidden / class lane dims
    are zero-padded to multiples of 128 inside this wrapper; the result is
    sliced back, so values match the unpadded computation.
    """
    B, D = x.shape
    H = w1.shape[1]
    C = w2.shape[1]

    Hp = _round_up(H, LANE)
    Cp = _round_up(C, LANE)

    # Zero-padded, bf16 weights; f32 biases (padded lanes exactly 0).
    w1p = jnp.zeros((D, Hp), jnp.bfloat16).at[:, :H].set(w1.astype(jnp.bfloat16))
    b1p = jnp.zeros((1, Hp), jnp.float32).at[0, :H].set(b1.astype(jnp.float32))
    w2p = jnp.zeros((Hp, Cp), jnp.bfloat16).at[:H, :C].set(w2.astype(jnp.bfloat16))
    b2p = jnp.zeros((1, Cp), jnp.float32).at[0, :C].set(b2.astype(jnp.float32))

    # Batch tile: multiple of 8 sublanes, capped so x/out double-buffers plus
    # the resident weights stay far inside v7x's 64 MiB VMEM.
    TB = max(8, min(_round_up(B, 8), block_batch))
    TB = (TB // 8) * 8
    Bp = _round_up(B, TB)

    xb = x.astype(jnp.bfloat16)
    if Bp != B:
        xb = jnp.zeros((Bp, D), jnp.bfloat16).at[:B].set(xb)

    out = pl.pallas_call(
        mlp_kernel,
        out_shape=jax.ShapeDtypeStruct((Bp, Cp), jnp.float32),
        grid=(Bp // TB,),
        in_specs=[
            pl.BlockSpec((TB, D), lambda i: (i, 0)),      # x tile (streamed)
            pl.BlockSpec((D, Hp), lambda i: (0, 0)),      # W1 (VMEM-resident)
            pl.BlockSpec((1, Hp), lambda i: (0, 0)),      # b1
            pl.BlockSpec((Hp, Cp), lambda i: (0, 0)),     # W2
            pl.BlockSpec((1, Cp), lambda i: (0, 0)),      # b2
        ],
        out_specs=pl.BlockSpec((TB, Cp), lambda i: (i, 0)),
        compiler_params=pltpu.CompilerParams(
            dimension_semantics=("parallel",),
        ),
    )(xb, w1p, b1p, w2p, b2p)

    return out[:B, :C]


if __name__ == "__main__":
    # Module defaults: input_dim=784, hidden_dim=50, num_classes=10.
    # Batch large enough to exercise batch tiling (grid of 2 x 128-row tiles).
    B, D, H, C = 256, 784, 50, 10

    key = jax.random.PRNGKey(0)
    kx, kw1, kb1, kw2, kb2 = jax.random.split(key, 5)

    x = jax.random.normal(kx, (B, D), dtype=jnp.float32)
    w1 = jax.random.normal(kw1, (D, H), dtype=jnp.float32) * 0.05
    b1 = jax.random.normal(kb1, (H,), dtype=jnp.float32) * 0.05
    w2 = jax.random.normal(kw2, (H, C), dtype=jnp.float32) * 0.05
    b2 = jax.random.normal(kb2, (C,), dtype=jnp.float32) * 0.05

    out = simple_mlp_forward(x, w1, b1, w2, b2, block_batch=128)
    out = jax.block_until_ready(out)
    assert out.shape == (B, C)

    # Reference with identical numerics (bf16 MXU operands, f32 accumulation,
    # f32 bias-add/ReLU) — matches the kernel tightly.
    x16, w1_16, w2_16 = (a.astype(jnp.bfloat16) for a in (x, w1, w2))
    h_ref = jnp.maximum(
        jnp.dot(x16, w1_16, preferred_element_type=jnp.float32) + b1, 0.0)
    ref = jnp.dot(h_ref.astype(jnp.bfloat16), w2_16,
                  preferred_element_type=jnp.float32) + b2
    assert jnp.allclose(out, ref, atol=5e-3, rtol=5e-3)

    # Sanity check against the full-f32 math (loose tol for bf16 rounding).
    ref_f32 = jnp.maximum(x @ w1 + b1, 0.0) @ w2 + b2
    assert jnp.allclose(out, ref_f32, atol=5e-2, rtol=5e-2)

    print("KERNEL_OK")
</pallas_src>

<mosaic_0001>
module attributes {stable_mosaic.version = 11 : i64} {
  func.func @mlp_kernel(%arg0: i32, %arg1: memref<128x784xbf16, #tpu.memory_space<vmem>>, %arg2: memref<784x128xbf16, #tpu.memory_space<vmem>>, %arg3: memref<1x128xf32, #tpu.memory_space<vmem>>, %arg4: memref<128x128xbf16, #tpu.memory_space<vmem>>, %arg5: memref<1x128xf32, #tpu.memory_space<vmem>>, %arg6: memref<128x128xf32, #tpu.memory_space<vmem>>) attributes {dimension_semantics = [#tpu.dimension_semantics<parallel>], iteration_bounds = array<i64: 2>, scalar_prefetch = 0 : i64, scratch_operands = 0 : i64, tpu.core_type = #tpu.core_type<tc>, window_params = [{transform_indices = @transform_0, window_bounds = array<i64: 128, 784>}, {pipeline_mode = #tpu.pipeline_mode<synchronous>, transform_indices = @transform_1, window_bounds = array<i64: 784, 128>}, {pipeline_mode = #tpu.pipeline_mode<synchronous>, transform_indices = @transform_2, window_bounds = array<i64: 1, 128>}, {pipeline_mode = #tpu.pipeline_mode<synchronous>, transform_indices = @transform_3, window_bounds = array<i64: 128, 128>}, {pipeline_mode = #tpu.pipeline_mode<synchronous>, transform_indices = @transform_4, window_bounds = array<i64: 1, 128>}, {transform_indices = @transform_5, window_bounds = array<i64: 128, 128>}]} {
    %c0 = arith.constant 0 : index
    %c0_0 = arith.constant 0 : index
    %0 = vector.load %arg1[%c0, %c0_0] : memref<128x784xbf16, #tpu.memory_space<vmem>>, vector<128x784xbf16>
    %c0_1 = arith.constant 0 : index
    %c0_2 = arith.constant 0 : index
    %1 = vector.load %arg2[%c0_1, %c0_2] : memref<784x128xbf16, #tpu.memory_space<vmem>>, vector<784x128xbf16>
    %cst = arith.constant dense<0.000000e+00> : vector<128x128xf32>
    %2 = tpu.matmul %0, %1, %cst {dimension_numbers = #tpu.dot_dimension_numbers<[1], [0], [0], [1], [0, 0, 1, 1], [], []>} : vector<128x784xbf16>, vector<784x128xbf16>, vector<128x128xf32> -> vector<128x128xf32>
    %c0_3 = arith.constant 0 : index
    %c0_4 = arith.constant 0 : index
    %3 = vector.load %arg3[%c0_3, %c0_4] : memref<1x128xf32, #tpu.memory_space<vmem>>, vector<1x128xf32>
    %4 = vector.broadcast %3 : vector<1x128xf32> to vector<128x128xf32>
    %5 = arith.addf %2, %4 : vector<128x128xf32>
    %cst_5 = arith.constant 0.000000e+00 : f32
    %6 = vector.broadcast %cst_5 : f32 to vector<128x128xf32>
    %7 = arith.maximumf %5, %6 : vector<128x128xf32>
    %8 = arith.truncf %7 : vector<128x128xf32> to vector<128x128xbf16>
    %c0_6 = arith.constant 0 : index
    %c0_7 = arith.constant 0 : index
    %9 = vector.load %arg4[%c0_6, %c0_7] : memref<128x128xbf16, #tpu.memory_space<vmem>>, vector<128x128xbf16>
    %cst_8 = arith.constant dense<0.000000e+00> : vector<128x128xf32>
    %10 = tpu.matmul %8, %9, %cst_8 {dimension_numbers = #tpu.dot_dimension_numbers<[1], [0], [0], [1], [0, 0, 1, 1], [], []>} : vector<128x128xbf16>, vector<128x128xbf16>, vector<128x128xf32> -> vector<128x128xf32>
    %c0_9 = arith.constant 0 : index
    %c0_10 = arith.constant 0 : index
    %11 = vector.load %arg5[%c0_9, %c0_10] : memref<1x128xf32, #tpu.memory_space<vmem>>, vector<1x128xf32>
    %12 = vector.broadcast %11 : vector<1x128xf32> to vector<128x128xf32>
    %13 = arith.addf %10, %12 : vector<128x128xf32>
    %c0_11 = arith.constant 0 : index
    %c0_12 = arith.constant 0 : index
    %14 = vector.load %arg6[%c0_11, %c0_12] : memref<128x128xf32, #tpu.memory_space<vmem>>, vector<128x128xf32>
    tpu.vector_store %arg6[%c0_11, %c0_12], %13 {strides = array<i32>} : memref<128x128xf32, #tpu.memory_space<vmem>>, vector<128x128xf32>,
    return
  }
  func.func @transform_0(%arg0: i32) -> (i32, i32) {
    %c0_i32 = arith.constant 0 : i32
    %c0_i32_0 = arith.constant 0 : i32
    return %arg0, %c0_i32 : i32, i32
  }
  func.func @transform_1(%arg0: i32) -> (i32, i32) {
    %c0_i32 = arith.constant 0 : i32
    %c0_i32_0 = arith.constant 0 : i32
    %c0_i32_1 = arith.constant 0 : i32
    return %c0_i32, %c0_i32_0 : i32, i32
  }
  func.func @transform_2(%arg0: i32) -> (i32, i32) {
    %c0_i32 = arith.constant 0 : i32
    %c0_i32_0 = arith.constant 0 : i32
    %c0_i32_1 = arith.constant 0 : i32
    return %c0_i32, %c0_i32_0 : i32, i32
  }
  func.func @transform_3(%arg0: i32) -> (i32, i32) {
    %c0_i32 = arith.constant 0 : i32
    %c0_i32_0 = arith.constant 0 : i32
    %c0_i32_1 = arith.constant 0 : i32
    return %c0_i32, %c0_i32_0 : i32, i32
  }
  func.func @transform_4(%arg0: i32) -> (i32, i32) {
    %c0_i32 = arith.constant 0 : i32
    %c0_i32_0 = arith.constant 0 : i32
    %c0_i32_1 = arith.constant 0 : i32
    return %c0_i32, %c0_i32_0 : i32, i32
  }
  func.func @transform_5(%arg0: i32) -> (i32, i32) {
    %c0_i32 = arith.constant 0 : i32
    %c0_i32_0 = arith.constant 0 : i32
    return %arg0, %c0_i32 : i32, i32
  }
}

</mosaic_0001>

<bundles_post_ra>
// kernel: tpu_custom_call.1
= control target key start
LH: loop header
LB: loop body
LE: loop exit
PB: predicated region body
PF: predicated region fallthrough
CT: control target
= control target key end

     0   :  { %10 = vsyncpa [#allocation3], 0  ;;  %s2786_s0 = inlined_call_operand.vmem [shape: bf16[256,784], index: 0, kind: input, shape index: {}]   ;;  %s2787_s1 = inlined_call_operand.vmem [shape: bf16[784,128], index: 1, kind: input, shape index: {}]   ;;  %s2788_s2 = inlined_call_operand.vmem [shape: f32[1,128], index: 2, kind: input, shape index: {}]   ;;  %s2789_s3 = inlined_call_operand.vmem [shape: bf16[128,128], index: 3, kind: input, shape index: {}]   ;;  %s2790_s4 = inlined_call_operand.vmem [shape: f32[1,128], index: 4, kind: input, shape index: {}]   ;;  %s2791_s5 = inlined_call_operand.hbm [shape: f32[256,128], index: 5, kind: output, shape index: {}]  }
   0x1   :  { %12 = vsyncpa [#allocation3 + $0x1], 0  ;;  %s2349_s18 = smov 0   ;;  %s2351_s19 = smov 0  }
   0x2   :  { %s2353_s20 = smov 0   ;;  %s2355_s21 = smov 0  }
   0x3 LB: > { %s2370_s22 = sadd.s32 4294967295, %s2314_s21   ;;  %s1670_s23 = sadd.s32 4294967294, %s2314_s21   ;;  %s2314_s21 = sphi %s2355_s21, %s2797_s21   ;;  %s2310_s20 = sphi %s2353_s20, %s2796_s20   ;;  %s2306_s19 = sphi %s2351_s19, %s2795_s19   ;;  %s2302_s18 = sphi %s2349_s18, %s2794_s18  }
   0x4   : > { %s2374_s24 = sadd.s32 1, %s2314_s21   ;;  %s135_s25 = sadd.s32 1, %s2310_s20 }
   0x5   : > { %s132_s26 = ssub.s32 %s2314_s21, %s2374_s24  ;;  %p145_p0 = scmp.ne.s32.totalorder %s2310_s20, %s2306_s19 }
   0x6   : > { %p133_p1 = scmp.eq.s32.totalorder %s132_s26, 0  ;;  %p146_p2 = scmp.eq.s32.totalorder %s2370_s22, 1 }
   0x7   : > { %p151_p3 = scmp.ne.s32.totalorder %s2306_s19, %s2302_s18  ;;  %p152_p4 = scmp.eq.s32.totalorder %s1670_s23, 1 }
   0x8   : > { %s2385_s27 = scalar_select %p133_p1, %s2310_s20, %s135_s25  }
   0x9   : > { %p2387_p5 = por %p146_p2, %p145_p0  ;;  %p2391_p6 = por %p152_p4, %p151_p3 }
   0xa   : > { %p1673_p7 = scmp.ge.s32.totalorder %s2314_s21, 1  ;;  %p192_p8 = scmp.lt.s32.totalorder %s2314_s21, 3 }
   0xc   : > { %p193_p9 = pnand %p1673_p7, %p192_p8 }
   0xd   : > { %v2115_v0 = vld [vmem:[%s2787_s1 + $0x40] sm:$0xff] (!%p193_p9)   ;;  %v2119_v4 = vld [vmem:[%s2787_s1 + $0x48] sm:$0xff] (!%p193_p9)   ;;  %v2123_v8 = vld [vmem:[%s2787_s1 + $0x50] sm:$0xff] (!%p193_p9)   ;;  %s1675_s17 = sshll.u32 (!%p193_p9), %s2370_s22, 4  ;;  %vm973_vm0 = vcmask (!%p193_p9), 130048   ;;  %s218_s23 = sand.u32 (!%p193_p9), 1, %s2306_s19  }
   0xe   : > { %196 = sbr.rel (%p193_p9) target bundleno = 623 (0x26f), region = 40  ;;  %v2116_v1 = vld [vmem:[%s2787_s1] sm:$0xff] (!%p193_p9)   ;;  %1806 = vmatprep.subr.bf16.mxu0 (!%p193_p9), %v2115_v0  ;;  %v2120_v5 = vld [vmem:[%s2787_s1 + $0x8] sm:$0xff] (!%p193_p9)   ;;  %v2124_v9 = vld [vmem:[%s2787_s1 + $0x10] sm:$0xff] (!%p193_p9)   ;;  %p222_p10 = scmp.lt.s32.totalorder (!%p193_p9), %s1675_s17, 31 }
   0xf   : > { %v2117_v2 = vld [vmem:[%s2787_s1 + $0xc0] sm:$0xff] (!%p193_p9)   ;;  %1807 = vmatpush3.bf16.msra.mxu0 (!%p193_p9), %v2116_v1  ;;  %v2121_v6 = vld [vmem:[%s2787_s1 + $0xc8] sm:$0xff] (!%p193_p9)   ;;  %v2125_v10 = vld [vmem:[%s2787_s1 + $0xd0] sm:$0xff] (!%p193_p9)   ;;  %s1805_s6 = sshll.u32 (!%p193_p9), %s2370_s22, 11  ;;  %s2745_s22 = scalar_lea.sflag (!%p193_p9), [#allocation3], %s218_s23 }
  0x10   : > { %v2118_v3 = vld [vmem:[%s2787_s1 + $0x80] sm:$0xff] (!%p193_p9)   ;;  %1870 = vmatprep.subr.bf16.mxu1 (!%p193_p9), %v2117_v2  ;;  %1808 = vmatprep.subr.bf16.mxu0 (!%p193_p9), %v2119_v4  ;;  %v2122_v7 = vld [vmem:[%s2787_s1 + $0x88] sm:$0xff] (!%p193_p9)   ;;  %v2126_v11 = vld [vmem:[%s2787_s1 + $0x90] sm:$0xff] (!%p193_p9)   ;;  %s2736_s10 = scalar_lea.hbm (!%p193_p9), %s2791_s5, %s1805_s6  ;;  %s2316_s12 = smov (!%p193_p9), [#allocation2]  }
  0x11   : > { %1871 = vmatpush3.bf16.msra.mxu1 (!%p193_p9), %v2118_v3  ;;  %v2127_v12 = vld [vmem:[%s2787_s1 + $0x58] sm:$0xff] (!%p193_p9)   ;;  %v2131_v16 = vld [vmem:[%s2787_s1 + $0x60] sm:$0xff] (!%p193_p9)   ;;  %v2135_v20 = vld [vmem:[%s2787_s1 + $0x68] sm:$0xff] (!%p193_p9)   ;;  %s2256_s13 = sshll.u32 (!%p193_p9), %s2316_s12, 4  ;;  %s2257_s13 = int_to_ptr.vmem [resolvable:$false] %s2256_s13 }
  0x12   : > { %1872 = vmatprep.subr.bf16.mxu1 (!%p193_p9), %v2121_v6  ;;  %v2128_v13 = vld [vmem:[%s2787_s1 + $0x18] sm:$0xff] (!%p193_p9)   ;;  %v2132_v17 = vld [vmem:[%s2787_s1 + $0x20] sm:$0xff] (!%p193_p9)   ;;  %v2136_v21 = vld [vmem:[%s2787_s1 + $0x28] sm:$0xff] (!%p193_p9)   ;;  %s2258_s14 = scalar_lea.vmem (!%p193_p9), %s2257_s13, 4096 }
  0x13   : > { %1809 = vmatpush3.bf16.msra.mxu0 (!%p193_p9), %v2120_v5  ;;  %v2129_v14 = vld [vmem:[%s2787_s1 + $0xd8] sm:$0xff] (!%p193_p9)   ;;  %v2133_v18 = vld [vmem:[%s2787_s1 + $0xe0] sm:$0xff] (!%p193_p9)   ;;  %v2137_v22 = vld [vmem:[%s2787_s1 + $0xe8] sm:$0xff] (!%p193_p9)  }
  0x14   : > { %1810 = vmatprep.subr.bf16.mxu0 (!%p193_p9), %v2123_v8  ;;  %v2130_v15 = vld [vmem:[%s2787_s1 + $0x98] sm:$0xff] (!%p193_p9)   ;;  %v2134_v19 = vld [vmem:[%s2787_s1 + $0xa0] sm:$0xff] (!%p193_p9)   ;;  %v2138_v23 = vld [vmem:[%s2787_s1 + $0xa8] sm:$0xff] (!%p193_p9)  }
  0x15   : > { %1873 = vmatpush3.bf16.msra.mxu1 %v2122_v7  ;;  %s2799_s17 = smov (!%p222_p10, %s1675_s17), 31  ;;  %v2139_v24 = vld [vmem:[%s2787_s1 + $0x70] sm:$0xff]   ;;  %v2143_v28 = vld [vmem:[%s2787_s1 + $0x78] sm:$0xff]   ;;  %v2150_v34 = vld [vmem:[%s2787_s1 + $0x140] sm:$0xff]  }
  0x16   : > { %1874 = vmatprep.subr.bf16.mxu1 %v2125_v10  ;;  %s2073_s9 = smul.u32 28, %s2799_s17  ;;  %v2140_v25 = vld [vmem:[%s2787_s1 + $0x30] sm:$0xff]   ;;  %v2144_v29 = vld [vmem:[%s2787_s1 + $0x38] sm:$0xff]   ;;  %v2154_v37 = vld [vmem:[%s2787_s1 + $0x100] sm:$0xff]   ;;  %s1674_s17 = sshll.u32 %s218_s23, 7 }
  0x17   : > { %1811 = vmatpush3.bf16.msra.mxu0 %v2124_v9  ;;  %v2141_v26 = vld [vmem:[%s2787_s1 + $0xf0] sm:$0xff]   ;;  %v2145_v30 = vld [vmem:[%s2787_s1 + $0xf8] sm:$0xff]   ;;  %v2158_v40 = vld [vmem:[%s2787_s1 + $0x148] sm:$0xff]  }
  0x18   : > { %1812 = vmatprep.subr.bf16.mxu0 %v2127_v12  ;;  %v2142_v27 = vld [vmem:[%s2787_s1 + $0xb0] sm:$0xff]   ;;  %s2488_s26 = scalar_lea.vmem %s2786_s0, %s2073_s9  ;;  %v2149_v33 = vld [vmem:[%s2787_s1 + $0xb8] sm:$0xff]   ;;  %v2161_v42 = vld [vmem:[%s2787_s1 + $0x108] sm:$0xff]  }
  0x19   : > { %1875 = vmatpush3.bf16.msra.mxu1 %v2126_v11  ;;  %v2146_v31 = vld [vmem:[%s2488_s26] ss:$28 sps:$4 sm:$0xff]   ;;  %v2151_v35 = vld [vmem:[%s2488_s26 + $0x8] ss:$28 sps:$4 sm:$0xff]   ;;  %v2157_v39 = vld [vmem:[%s2488_s26 + $0x38] ss:$28 sps:$4 sm:$0xff]  }
  0x1a   : > { %1876 = vmatprep.subr.bf16.mxu1 %v2129_v14  ;;  %v2148_v32 = vld [vmem:[%s2488_s26 + $0x4] ss:$28 sps:$4 sm:$0xff]   ;;  %v2153_v36 = vld [vmem:[%s2488_s26 + $0xc] ss:$28 sps:$4 sm:$0xff]   ;;  %v2155_v38 = vld [vmem:[%s2488_s26 + $0x3c] ss:$28 sps:$4 sm:$0xff]  }
  0x1b   : > { %1813 = vmatpush3.bf16.msra.mxu0 %v2128_v13  ;;  %1030 = vmatprep.mubr.bf16.mxu0 %v2148_v32  ;;  %v2159_v41 = vld [vmem:[%s2488_s26 + $0x44] ss:$28 sps:$4 sm:$0xff]   ;;  %v2163_v44 = vld [vmem:[%s2488_s26 + $0x74] ss:$28 sps:$4 sm:$0xff]   ;;  %v2167_v46 = vld [vmem:[%s2488_s26 + $0x7c] ss:$28 sps:$4 sm:$0xff]  }
  0x1c   : > { %1814 = vmatprep.subr.bf16.mxu0 %v2131_v16  ;;  %1127 = vmatprep.mubr.bf16.mxu1 %v2153_v36  ;;  %v2162_v43 = vld [vmem:[%s2488_s26 + $0x40] ss:$28 sps:$4 sm:$0xff]   ;;  %v2166_v45 = vld [vmem:[%s2787_s1 + $0x150] sm:$0xff]   ;;  %v2171_v49 = vld [vmem:[%s2488_s26 + $0xac] ss:$28 sps:$4 sm:$0xff]  }
  0x1d   : > { %1877 = vmatpush3.bf16.msra.mxu1 %v2130_v15  ;;  %v2169_v47 = vld [vmem:[%s2787_s1 + $0x110] sm:$0xff]   ;;  %v2174_v50 = vld [vmem:[%s2787_s1 + $0x158] sm:$0xff]   ;;  %v2182_v54 = vld [vmem:[%s2787_s1 + $0x160] sm:$0xff]  }
  0x1e   : > { %1878 = vmatprep.subr.bf16.mxu1 %v2133_v18  ;;  %v2165_v48 = vld [vmem:[%s2488_s26 + $0x70] ss:$28 sps:$4 sm:$0xff]   ;;  %v2170_v51 = vld [vmem:[%s2488_s26 + $0x78] ss:$28 sps:$4 sm:$0xff]   ;;  %v2173_v55 = vld [vmem:[%s2488_s26 + $0xa8] ss:$28 sps:$4 sm:$0xff]  }
  0x1f   : > { %1815 = vmatpush3.bf16.msra.mxu0 %v2132_v17  ;;  %v2177_v52 = vld [vmem:[%s2787_s1 + $0x118] sm:$0xff]   ;;  %v2175_v53 = vld [vmem:[%s2488_s26 + $0xb4] ss:$28 sps:$4 sm:$0xff]   ;;  %v2185_v56 = vld [vmem:[%s2787_s1 + $0x120] sm:$0xff]  }
  0x20   : > { %1816 = vmatprep.subr.bf16.mxu0 %v2135_v20  ;;  %v2179_v57 = vld [vmem:[%s2488_s26 + $0xe4] ss:$28 sps:$4 sm:$0xff]   ;;  %v2178_v59 = vld [vmem:[%s2488_s26 + $0xb0] ss:$28 sps:$4 sm:$0xff]   ;;  %v2188_v1 = vld [vmem:[%s2488_s26 + $0x11c] ss:$28 sps:$4 sm:$0xff]  }
  0x21   : > { %1879 = vmatpush3.bf16.msra.mxu1 %v2134_v19  ;;  %v2187_v58 = vld [vmem:[%s2787_s1 + $0x180] sm:$0xff]   ;;  %v2191_v60 = vld [vmem:[%s2787_s1 + $0x168] sm:$0xff]   ;;  %v2199_v0 = vld [vmem:[%s2787_s1 + $0x170] sm:$0xff]  }
  0x22   : > { %1880 = vmatprep.subr.bf16.mxu1 %v2137_v22  ;;  %v2183_v61 = vld [vmem:[%s2488_s26 + $0xec] ss:$28 sps:$4 sm:$0xff]   ;;  %v2181_v63 = vld [vmem:[%s2488_s26 + $0xe0] ss:$28 sps:$4 sm:$0xff]   ;;  %v2202_v2 = vld [vmem:[%s2787_s1 + $0x130] sm:$0xff]  }
  0x23   : > { %1817 = vmatpush3.bf16.msra.mxu0 %v2136_v21  ;;  %v2194_v62 = vld [vmem:[%s2787_s1 + $0x128] sm:$0xff]   ;;  %v2192_v4 = vld [vmem:[%s2488_s26 + $0x124] ss:$28 sps:$4 sm:$0xff]   ;;  %v2207_v5 = vld [vmem:[%s2787_s1 + $0x178] sm:$0xff]  }
  0x24   : > { %1818 = vmatprep.subr.bf16.mxu0 %v2139_v24  ;;  %v2186_v3 = vld [vmem:[%s2488_s26 + $0xe8] ss:$28 sps:$4 sm:$0xff]   ;;  %v2210_v6 = vld [vmem:[%s2787_s1 + $0x138] sm:$0xff]   ;;  %v2196_v8 = vld [vmem:[%s2488_s26 + $0x154] ss:$28 sps:$4 sm:$0xff]  }
  0x25   : > { %1881 = vmatpush3.bf16.msra.mxu1 %v2138_v23  ;;  %v2190_v7 = vld [vmem:[%s2488_s26 + $0x118] ss:$28 sps:$4 sm:$0xff]   ;;  %v2195_v9 = vld [vmem:[%s2488_s26 + $0x120] ss:$28 sps:$4 sm:$0xff]   ;;  %v2198_v11 = vld [vmem:[%s2488_s26 + $0x150] ss:$28 sps:$4 sm:$0xff]  }
  0x26   : > { %1882 = vmatprep.subr.bf16.mxu1 %v2141_v26  ;;  %v2200_v10 = vld [vmem:[%s2488_s26 + $0x15c] ss:$28 sps:$4 sm:$0xff]   ;;  %v2204_v12 = vld [vmem:[%s2488_s26 + $0x18c] ss:$28 sps:$4 sm:$0xff]   ;;  %v2208_v14 = vld [vmem:[%s2488_s26 + $0x194] ss:$28 sps:$4 sm:$0xff]  }
  0x27   : > { %1819 = vmatpush3.bf16.msra.mxu0 %v2140_v25  ;;  %v2203_v13 = vld [vmem:[%s2488_s26 + $0x158] ss:$28 sps:$4 sm:$0xff]   ;;  %v2206_v15 = vld [vmem:[%s2488_s26 + $0x188] ss:$28 sps:$4 sm:$0xff]   ;;  %v2211_v16 = vld [vmem:[%s2488_s26 + $0x190] ss:$28 sps:$4 sm:$0xff]  }
  0x28   : > { %1820 = vmatprep.subr.bf16.mxu0 %v2143_v28  ;;  %v2214_v17 = vld [vmem:[%s2488_s26 + $0x14] ss:$28 sps:$4 sm:$0xff]   ;;  %v2217_v20 = vld [vmem:[%s2488_s26 + $0x4c] ss:$28 sps:$4 sm:$0xff]   ;;  %v2220_v24 = vld [vmem:[%s2488_s26 + $0x84] ss:$28 sps:$4 sm:$0xff]  }
  0x29   : > { %1883 = vmatpush3.bf16.msra.mxu1 %v2142_v27  ;;  %v2215_v18 = vld [vmem:[%s2488_s26 + $0x18] ss:$28 sps:$4 sm:$0xff]   ;;  %v2212_v19 = vld [vmem:[%s2488_s26 + $0x10] ss:$28 sps:$4 sm:$0xff]   ;;  %v2223_v22 = vld [vmem:[%s2488_s26 + $0x88] ss:$28 sps:$4 sm:$0xff]  }
  0x2a   : > { %1884 = vmatprep.subr.bf16.mxu1 %v2145_v30  ;;  %v2216_v21 = vld [vmem:[%s2488_s26 + $0x50] ss:$28 sps:$4 sm:$0xff]   ;;  %v2219_v23 = vld [vmem:[%s2488_s26 + $0x48] ss:$28 sps:$4 sm:$0xff]   ;;  %v2224_v25 = vld [vmem:[%s2488_s26 + $0xc0] ss:$28 sps:$4 sm:$0xff]  }
  0x2b   : > { %1821 = vmatpush3.bf16.msra.mxu0 %v2144_v29  ;;  %v2231_v26 = vld [vmem:[%s2488_s26 + $0xf8] ss:$28 sps:$4 sm:$0xff]   ;;  %v2222_v27 = vld [vmem:[%s2488_s26 + $0x80] ss:$28 sps:$4 sm:$0xff]   ;;  %v2232_v29 = vld [vmem:[%s2488_s26 + $0x130] ss:$28 sps:$4 sm:$0xff]  }
  0x2c   : > { %1934 = vmatprep.subr.bf16.mxu0 %v2150_v34  ;;  %v2225_v28 = vld [vmem:[%s2488_s26 + $0xbc] ss:$28 sps:$4 sm:$0xff]   ;;  %v2239_v30 = vld [vmem:[%s2488_s26 + $0x168] ss:$28 sps:$4 sm:$0xff]   ;;  %v2228_v32 = vld [vmem:[%s2488_s26 + $0xf4] ss:$28 sps:$4 sm:$0xff]  }
  0x2d   : > { %1885 = vmatpush3.bf16.msra.mxu1 %v2149_v33  ;;  %v2240_v33 = vld [vmem:[%s2488_s26 + $0x1a0] ss:$28 sps:$4 sm:$0xff]   ;;  %v2230_v34 = vld [vmem:[%s2488_s26 + $0xf0] ss:$28 sps:$4 sm:$0xff]   ;;  %v2235_v36 = vld [vmem:[%s2488_s26 + $0x128] ss:$28 sps:$4 sm:$0xff]  }
  0x2e   : > { %1031 = vmatmul.mubr.bf16.vlgmr.msra.gmra.mrb[0].mxu0 %v2146_v31  ;;  %2023 = vmatprep.subr.bf16.mxu1 %v2187_v58  ;;  %v2227_v31 = vld [vmem:[%s2488_s26 + $0xb8] ss:$28 sps:$4 sm:$0xff]  }
  0x2f   : > { %1935 = vmatpush3.bf16.msra.mxu0 %v2154_v37  ;;  %1038 = vmatprep.mubr.bf16.mxu0 %v2155_v38  ;;  %v2236_v37 = vld [vmem:[%s2488_s26 + $0x164] ss:$28 sps:$4 sm:$0xff]  }
  0x30   : > { %1128 = vmatmul.mubr.bf16.vlgmr.msra.gmra.mrb[0].mxu1 %v2151_v35  ;;  %1936 = vmatprep.subr.bf16.mxu0 %v2158_v40  ;;  %v2233_v35 = vld [vmem:[%s2488_s26 + $0x12c] ss:$28 sps:$4 sm:$0xff]   ;;  %v2238_v38 = vld [vmem:[%s2488_s26 + $0x160] ss:$28 sps:$4 sm:$0xff]   ;;  %v2243_v40 = vld [vmem:[%s2488_s26 + $0x198] ss:$28 sps:$4 sm:$0xff]  }
  0x31   : > { %1135 = vmatprep.mubr.bf16.mxu1 %v2159_v41  ;;  %2024 = vmatpush3.bf16.msra.mxu1 %v2187_v58  ;;  %v2244_v41 = vld [vmem:[%s2789_s3] sm:$0xff]  }
  0x32   : > { %2041 = vmatprep.subr.bf16.mxu1 %v2244_v41 }
  0x33   : > { %1937 = vmatpush3.bf16.msra.mxu0 %v2161_v42  ;;  %v2245_v42 = vld [vmem:[%s2789_s3 + $0x8] sm:$0xff]  }
  0x34   : > { %1938 = vmatprep.subr.bf16.mxu0 %v2166_v45  ;;  %v2248_v45 = vld [vmem:[%s2789_s3 + $0x20] sm:$0xff]  }
  0x36   : > { %1039 = vmatmul.mubr.bf16.gmra.mrb[4].mxu0 %v2157_v39  ;;  %v2241_v39 = vld [vmem:[%s2488_s26 + $0x19c] ss:$28 sps:$4 sm:$0xff]   ;;  %s2716_s26 = scalar_lea.vmem [#allocation2], %s1674_s17 }
  0x37   : > { %1046 = vmatprep.mubr.bf16.mxu0 %v2163_v44  ;;  %1939 = vmatpush3.bf16.msra.mxu0 %v2169_v47  ;;  %v2247_v44 = vld [vmem:[%s2789_s3 + $0x18] sm:$0xff]   ;;  %v2250_v47 = vld [vmem:[%s2789_s3 + $0x30] sm:$0xff]   ;;  %s1608_s7 = sshll.u32 %s2716_s26, 4  ;;  %s2738_s7 = int_to_ptr.vmem [resolvable:$true] %s1608_s7 }
  0x38   : > { %1136 = vmatmul.mubr.bf16.gmra.mrb[4].mxu1 %v2162_v43  ;;  %1940 = vmatprep.subr.bf16.mxu0 %v2174_v50  ;;  %v2246_v43 = vld [vmem:[%s2789_s3 + $0x10] sm:$0xff]   ;;  %v2641_v50 = vld [vmem:[%s2788_s2] ss:$0 sm:$0xff]  ;;  %s2252_s11 = scalar_lea.vmem %s2738_s7, 2048  ;;  %p2259_p0 = scmp.lt.s32.totalorder %s2738_s7, %s2257_s13 }
  0x39   : > { %1143 = vmatprep.mubr.bf16.mxu1 %v2167_v46  ;;  %v2249_v46 = vld [vmem:[%s2789_s3 + $0x28] sm:$0xff]   ;;  %p2253_p11 = scmp.ne.s32.totalorder %s2738_s7, %s2252_s11  ;;  %p2260_p1 = scmp.lt.s32.totalorder %s2258_s14, %s2252_s11 }
  0x3b   : > { %1941 = vmatpush3.bf16.msra.mxu0 %v2177_v52  ;;  %p2254_p12 = pnand %p2253_p11, %p2387_p5  ;;  %p2261_p2 = por %p2260_p1, %p2259_p0 }
  0x3c   : > { %1942 = vmatprep.subr.bf16.mxu0 %v2182_v54 }
  0x3d   : > { %p2255_p13 = pneg %p2254_p12 }
  0x3e   : > { %1047 = vmatmul.mubr.bf16.gmra.mrb[8].mxu0 %v2165_v48  ;;  %v2251_v48 = vld [vmem:[%s2789_s3 + $0x38] sm:$0xff]  }
  0x3f   : > { %1054 = vmatprep.mubr.bf16.mxu0 %v2171_v49  ;;  %1943 = vmatpush3.bf16.msra.mxu0 %v2185_v56  ;;  %p2262_p3 = pnand %p2261_p2, %p2255_p13 }
  0x40   : > { %1144 = vmatmul.mubr.bf16.gmra.mrb[8].mxu1 %v2170_v51  ;;  %1944 = vmatprep.subr.bf16.mxu0 %v2191_v60 }
  0x41   : > { %1151 = vmatprep.mubr.bf16.mxu1 %v2175_v53 }
  0x43   : > { %1945 = vmatpush3.bf16.msra.mxu0 %v2194_v62 }
  0x44   : > { %1946 = vmatprep.subr.bf16.mxu0 %v2199_v0 }
  0x46   : > { %1055 = vmatmul.mubr.bf16.gmra.mrb[12].mxu0 %v2173_v55 }
  0x47   : > { %1062 = vmatprep.mubr.bf16.mxu0 %v2179_v57  ;;  %1947 = vmatpush3.bf16.msra.mxu0 %v2202_v2 }
  0x48   : > { %1152 = vmatmul.mubr.bf16.gmra.mrb[12].mxu1 %v2178_v59  ;;  %1948 = vmatprep.subr.bf16.mxu0 %v2207_v5 }
  0x49   : > { %1159 = vmatprep.mubr.bf16.mxu1 %v2183_v61 }
  0x4b   : > { %1949 = vmatpush3.bf16.msra.mxu0 %v2210_v6 }
  0x4e   : > { %1063 = vmatmul.mubr.bf16.gmra.mrb[16].mxu0 %v2181_v63 }
  0x4f   : > { %1070 = vmatprep.mubr.bf16.mxu0 %v2188_v1 }
  0x50   : > { %1160 = vmatmul.mubr.bf16.gmra.mrb[16].mxu1 %v2186_v3 }
  0x51   : > { %1167 = vmatprep.mubr.bf16.mxu1 %v2192_v4 }
  0x56   : > { %1071 = vmatmul.mubr.bf16.gmra.mrb[20].mxu0 %v2190_v7 }
  0x57   : > { %1078 = vmatprep.mubr.bf16.mxu0 %v2196_v8 }
  0x58   : > { %1168 = vmatmul.mubr.bf16.gmra.mrb[20].mxu1 %v2195_v9 }
  0x59   : > { %1175 = vmatprep.mubr.bf16.mxu1 %v2200_v10 }
  0x5e   : > { %1079 = vmatmul.mubr.bf16.gmra.mrb[24].mxu0 %v2198_v11 }
  0x5f   : > { %1086 = vmatprep.mubr.bf16.mxu0 %v2204_v12 }
  0x60   : > { %1176 = vmatmul.mubr.bf16.gmra.mrb[24].mxu1 %v2203_v13 }
  0x61   : > { %1183 = vmatprep.mubr.bf16.mxu1 %v2208_v14 }
  0x66   : > { %1087 = vmatmul.mubr.bf16.gmra.mrb[28].mxu0 %v2206_v15 }
  0x67   : > { %1224 = vmatprep.mubr.bf16.mxu0 %v2214_v17 }
  0x68   : > { %1184 = vmatmul.mubr.bf16.gmra.mrb[28].mxu1 %v2211_v16 }
  0x69   : > { %2025 = vmatprep.mubr.msk.bf16.mxu1 %vm973_vm0, %v2215_v18 }
  0x6e   : > { %1225 = vmatmul.mubr.bf16.vlgmr.msra.gmra.mrb[32].mxu0 %v2212_v19 }
  0x6f   : > { %1232 = vmatprep.mubr.bf16.mxu0 %v2217_v20 }
  0x70   : > { %2026 = vmatmul.mubr.msk.bf16.vlgmr.msra.gmra.mrb[32].mxu1 %vm973_vm0, %v2216_v21 }
  0x71   : > { %2029 = vmatprep.mubr.msk.bf16.mxu1 %vm973_vm0, %v2223_v22  ;;  %2042 = vmatpush3.bf16.msra.mxu1 %v2244_v41 }
  0x72   : > { %2043 = vmatprep.subr.bf16.mxu1 %v2245_v42 }
  0x75   : > { %2044 = vmatpush3.bf16.msra.mxu1 %v2245_v42 }
  0x76   : > { %1233 = vmatmul.mubr.bf16.gmra.mrb[36].mxu0 %v2219_v23  ;;  %2045 = vmatprep.subr.bf16.mxu1 %v2246_v43 }
  0x77   : > { %1240 = vmatprep.mubr.bf16.mxu0 %v2220_v24 }
  0x78   : > { %2030 = vmatmul.mubr.msk.bf16.gmra.mrb[36].mxu1 %vm973_vm0, %v2224_v25 }
  0x79   : > { %2033 = vmatprep.mubr.msk.bf16.mxu1 %vm973_vm0, %v2231_v26  ;;  %2046 = vmatpush3.bf16.msra.mxu1 %v2246_v43 }
  0x7a   : > { %2047 = vmatprep.subr.bf16.mxu1 %v2247_v44 }
  0x7d   : > { %2048 = vmatpush3.bf16.msra.mxu1 %v2247_v44 }
  0x7e   : > { %1241 = vmatmul.mubr.bf16.gmra.mrb[40].mxu0 %v2222_v27  ;;  %2049 = vmatprep.subr.bf16.mxu1 %v2248_v45 }
  0x7f   : > { %1248 = vmatprep.mubr.bf16.mxu0 %v2225_v28 }
  0x80   : > { %2034 = vmatmul.mubr.msk.bf16.gmra.mrb[40].mxu1 %vm973_vm0, %v2232_v29 }
  0x81   : > { %2037 = vmatprep.mubr.msk.bf16.mxu1 %vm973_vm0, %v2239_v30  ;;  %2050 = vmatpush3.bf16.msra.mxu1 %v2248_v45 }
  0x82   : > { %2051 = vmatprep.subr.bf16.mxu1 %v2249_v46 }
  0x85   : > { %2052 = vmatpush3.bf16.msra.mxu1 %v2249_v46 }
  0x86   : > { %1249 = vmatmul.mubr.bf16.gmra.mrb[44].mxu0 %v2227_v31  ;;  %2053 = vmatprep.subr.bf16.mxu1 %v2250_v47 }
  0x87   : > { %1256 = vmatprep.mubr.bf16.mxu0 %v2228_v32 }
  0x88   : > { %2038 = vmatmul.mubr.msk.bf16.gmra.mrb[44].mxu1 %vm973_vm0, %v2240_v33 }
  0x89   : > { %2054 = vmatpush3.bf16.msra.mxu1 %v2250_v47 }
  0x8a   : > { %2055 = vmatprep.subr.bf16.mxu1 %v2251_v48 }
  0x8d   : > { %2056 = vmatpush3.bf16.msra.mxu1 %v2251_v48 }
  0x8e   : > { %1257 = vmatmul.mubr.bf16.gmra.mrb[48].mxu0 %v2230_v34 }
  0x8f   : > { %1264 = vmatprep.mubr.bf16.mxu0 %v2233_v35 }
  0x96   : > { %1265 = vmatmul.mubr.bf16.gmra.mrb[52].mxu0 %v2235_v36 }
  0x97   : > { %1272 = vmatprep.mubr.bf16.mxu0 %v2236_v37 }
  0x9e   : > { %1273 = vmatmul.mubr.bf16.gmra.mrb[56].mxu0 %v2238_v38 }
  0x9f   : > { %1280 = vmatprep.mubr.bf16.mxu0 %v2241_v39 }
  0xa6   : > { %1281 = vmatmul.mubr.bf16.gmra.mrb[60].mxu0 %v2243_v40 }
 0x101   : > { %v1822_v49 = vpop.f32.mrb[0].mxu0 }
 0x102   : > { %v1823_v51 = vpop.f32.mrb[1].mxu0 }
 0x103   : > { %v1824_v52 = vadd.f32 %v1823_v51, %v1822_v49  ;;  %v1825_v53 = vpop.f32.mrb[2].mxu0  ;;  %v1886_v54 = vpop.f32.mrb[0].mxu1 }
 0x104   : > { %v1826_v55 = vpop.f32.mrb[3].mxu0  ;;  %v1887_v58 = vpop.f32.mrb[1].mxu1 }
 0x105   : > { %v1033_v56 = vadd.f32 %v1824_v52, %v2641_v50  ;;  %v1827_v57 = vadd.f32 %v1826_v55, %v1825_v53  ;;  %v1888_v59 = vadd.f32 %v1887_v58, %v1886_v54  ;;  %v1889_v60 = vpop.f32.mrb[2].mxu1 }
 0x106   : > { %v1890_v62 = vpop.f32.mrb[3].mxu1 }
 0x107   : > { %v1036_v61 = vadd.f32 %v1827_v57, %v2641_v50  ;;  %v2645_v63 = vadd.f32 %v1888_v59, %v1033_v56  ;;  %v1891_v0 = vadd.f32 %v1890_v62, %v1889_v60 }
 0x109   : > { %v1828_v1 = vpop.f32.mrb[4].mxu0  ;;  %v2647_v2 = vadd.f32 %v1891_v0, %v1036_v61 }
 0x10a   : > { %v1829_v3 = vpop.f32.mrb[5].mxu0 }
 0x10b   : > { %v1830_v4 = vadd.f32 %v1829_v3, %v1828_v1  ;;  %v1831_v5 = vpop.f32.mrb[6].mxu0  ;;  %v1892_v6 = vpop.f32.mrb[4].mxu1 }
 0x10c   : > { %v1832_v7 = vpop.f32.mrb[7].mxu0  ;;  %v1893_v10 = vpop.f32.mrb[5].mxu1 }
 0x10d   : > { %v1041_v8 = vadd.f32 %v1830_v4, %v2641_v50  ;;  %v1833_v9 = vadd.f32 %v1832_v7, %v1831_v5  ;;  %v1894_v11 = vadd.f32 %v1893_v10, %v1892_v6  ;;  %v1895_v12 = vpop.f32.mrb[6].mxu1 }
 0x10e   : > { %v1896_v14 = vpop.f32.mrb[7].mxu1 }
 0x10f   : > { %v1044_v13 = vadd.f32 %v1833_v9, %v2641_v50  ;;  %v2651_v15 = vadd.f32 %v1894_v11, %v1041_v8  ;;  %v1897_v16 = vadd.f32 %v1896_v14, %v1895_v12 }
 0x111   : > { %v1834_v17 = vpop.f32.mrb[8].mxu0  ;;  %v2653_v18 = vadd.f32 %v1897_v16, %v1044_v13 }
 0x112   : > { %v1835_v19 = vpop.f32.mrb[9].mxu0 }
 0x113   : > { %v1836_v20 = vadd.f32 %v1835_v19, %v1834_v17  ;;  %v1837_v21 = vpop.f32.mrb[10].mxu0  ;;  %v1898_v22 = vpop.f32.mrb[8].mxu1 }
 0x114   : > { %v1838_v23 = vpop.f32.mrb[11].mxu0  ;;  %v1899_v26 = vpop.f32.mrb[9].mxu1 }
 0x115   : > { %v1049_v24 = vadd.f32 %v1836_v20, %v2641_v50  ;;  %v1839_v25 = vadd.f32 %v1838_v23, %v1837_v21  ;;  %v1900_v27 = vadd.f32 %v1899_v26, %v1898_v22  ;;  %v1901_v28 = vpop.f32.mrb[10].mxu1 }
 0x116   : > { %v1902_v30 = vpop.f32.mrb[11].mxu1 }
 0x117   : > { %v1052_v29 = vadd.f32 %v1839_v25, %v2641_v50  ;;  %v2657_v31 = vadd.f32 %v1900_v27, %v1049_v24  ;;  %v1903_v32 = vadd.f32 %v1902_v30, %v1901_v28 }
 0x119   : > { %v1840_v33 = vpop.f32.mrb[12].mxu0  ;;  %v2659_v34 = vadd.f32 %v1903_v32, %v1052_v29 }
 0x11a   : > { %v1841_v35 = vpop.f32.mrb[13].mxu0 }
 0x11b   : > { %v1842_v36 = vadd.f32 %v1841_v35, %v1840_v33  ;;  %v1843_v37 = vpop.f32.mrb[14].mxu0  ;;  %v1904_v38 = vpop.f32.mrb[12].mxu1 }
 0x11c   : > { %v1844_v39 = vpop.f32.mrb[15].mxu0  ;;  %v1905_v42 = vpop.f32.mrb[13].mxu1 }
 0x11d   : > { %v1057_v40 = vadd.f32 %v1842_v36, %v2641_v50  ;;  %v1845_v41 = vadd.f32 %v1844_v39, %v1843_v37  ;;  %v1906_v43 = vadd.f32 %v1905_v42, %v1904_v38  ;;  %v1907_v44 = vpop.f32.mrb[14].mxu1 }
 0x11e   : > { %v1908_v46 = vpop.f32.mrb[15].mxu1 }
 0x11f   : > { %v1060_v45 = vadd.f32 %v1845_v41, %v2641_v50  ;;  %v2663_v47 = vadd.f32 %v1906_v43, %v1057_v40  ;;  %v1909_v48 = vadd.f32 %v1908_v46, %v1907_v44 }
 0x121   : > { %v1846_v49 = vpop.f32.mrb[16].mxu0  ;;  %v2665_v51 = vadd.f32 %v1909_v48, %v1060_v45 }
 0x122   : > { %v1847_v52 = vpop.f32.mrb[17].mxu0 }
 0x123   : > { %v1848_v53 = vadd.f32 %v1847_v52, %v1846_v49  ;;  %v1849_v54 = vpop.f32.mrb[18].mxu0  ;;  %v1910_v55 = vpop.f32.mrb[16].mxu1 }
 0x124   : > { %v1850_v56 = vpop.f32.mrb[19].mxu0  ;;  %v1911_v59 = vpop.f32.mrb[17].mxu1 }
 0x125   : > { %v1065_v57 = vadd.f32 %v1848_v53, %v2641_v50  ;;  %v1851_v58 = vadd.f32 %v1850_v56, %v1849_v54  ;;  %v1912_v60 = vadd.f32 %v1911_v59, %v1910_v55  ;;  %v1913_v61 = vpop.f32.mrb[18].mxu1 }
 0x126   : > { %v1914_v0 = vpop.f32.mrb[19].mxu1 }
 0x127   : > { %v1068_v62 = vadd.f32 %v1851_v58, %v2641_v50  ;;  %v2669_v1 = vadd.f32 %v1912_v60, %v1065_v57  ;;  %v1915_v3 = vadd.f32 %v1914_v0, %v1913_v61 }
 0x129   : > { %v1852_v4 = vpop.f32.mrb[20].mxu0  ;;  %v2671_v5 = vadd.f32 %v1915_v3, %v1068_v62 }
 0x12a   : > { %v1853_v6 = vpop.f32.mrb[21].mxu0 }
 0x12b   : > { %v1854_v7 = vadd.f32 %v1853_v6, %v1852_v4  ;;  %v1855_v8 = vpop.f32.mrb[22].mxu0  ;;  %v1916_v9 = vpop.f32.mrb[20].mxu1 }
 0x12c   : > { %v1856_v10 = vpop.f32.mrb[23].mxu0  ;;  %v1917_v13 = vpop.f32.mrb[21].mxu1 }
 0x12d   : > { %v1073_v11 = vadd.f32 %v1854_v7, %v2641_v50  ;;  %v1857_v12 = vadd.f32 %v1856_v10, %v1855_v8  ;;  %v1918_v14 = vadd.f32 %v1917_v13, %v1916_v9  ;;  %v1919_v16 = vpop.f32.mrb[22].mxu1 }
 0x12e   : > { %v1920_v19 = vpop.f32.mrb[23].mxu1 }
 0x12f   : > { %v1076_v17 = vadd.f32 %v1857_v12, %v2641_v50  ;;  %v2675_v20 = vadd.f32 %v1918_v14, %v1073_v11  ;;  %v1921_v21 = vadd.f32 %v1920_v19, %v1919_v16 }
 0x131   : > { %v1858_v22 = vpop.f32.mrb[24].mxu0  ;;  %v2677_v23 = vadd.f32 %v1921_v21, %v1076_v17 }
 0x132   : > { %v1859_v24 = vpop.f32.mrb[25].mxu0 }
 0x133   : > { %v1860_v25 = vadd.f32 %v1859_v24, %v1858_v22  ;;  %v1861_v26 = vpop.f32.mrb[26].mxu0  ;;  %v1922_v27 = vpop.f32.mrb[24].mxu1 }
 0x134   : > { %v1862_v28 = vpop.f32.mrb[27].mxu0  ;;  %v1923_v32 = vpop.f32.mrb[25].mxu1 }
 0x135   : > { %v1081_v29 = vadd.f32 %v1860_v25, %v2641_v50  ;;  %v1863_v30 = vadd.f32 %v1862_v28, %v1861_v26  ;;  %v1924_v33 = vadd.f32 %v1923_v32, %v1922_v27  ;;  %v1925_v35 = vpop.f32.mrb[26].mxu1 }
 0x136   : > { %v1926_v37 = vpop.f32.mrb[27].mxu1 }
 0x137   : > { %v1084_v36 = vadd.f32 %v1863_v30, %v2641_v50  ;;  %v2681_v38 = vadd.f32 %v1924_v33, %v1081_v29  ;;  %v1927_v39 = vadd.f32 %v1926_v37, %v1925_v35 }
 0x139   : > { %v1864_v40 = vpop.f32.mrb[28].mxu0  ;;  %v2683_v41 = vadd.f32 %v1927_v39, %v1084_v36 }
 0x13a   : > { %v1865_v42 = vpop.f32.mrb[29].mxu0 }
 0x13b   : > { %v1866_v43 = vadd.f32 %v1865_v42, %v1864_v40  ;;  %v1867_v44 = vpop.f32.mrb[30].mxu0  ;;  %v1928_v45 = vpop.f32.mrb[28].mxu1 }
 0x13c   : > { %v1868_v46 = vpop.f32.mrb[31].mxu0  ;;  %v1929_v52 = vpop.f32.mrb[29].mxu1 }
 0x13d   : > { %v1089_v48 = vadd.f32 %v1866_v43, %v2641_v50  ;;  %v1869_v49 = vadd.f32 %v1868_v46, %v1867_v44  ;;  %v1930_v53 = vadd.f32 %v1929_v52, %v1928_v45  ;;  %v1931_v54 = vpop.f32.mrb[30].mxu1 }
 0x13e   : > { %v1932_v56 = vpop.f32.mrb[31].mxu1 }
 0x13f   : > { %v1092_v55 = vadd.f32 %v1869_v49, %v2641_v50  ;;  %v2687_v57 = vadd.f32 %v1930_v53, %v1089_v48  ;;  %v1933_v58 = vadd.f32 %v1932_v56, %v1931_v54 }
 0x141   : > { %v1950_v59 = vpop.f32.mrb[32].mxu0  ;;  %v2689_v60 = vadd.f32 %v1933_v58, %v1092_v55 }
 0x142   : > { %v1951_v61 = vpop.f32.mrb[33].mxu0 }
 0x143   : > { %v1952_v62 = vadd.f32 %v1951_v61, %v1950_v59  ;;  %v1953_v0 = vpop.f32.mrb[34].mxu0  ;;  %v2027_v4 = vpop.f32.mrb[32].mxu1 }
 0x144   : > { %v1954_v3 = vpop.f32.mrb[35].mxu0  ;;  %v1323_v8 = vpop.f32.mrb[33].mxu1 }
 0x145   : > { %v1955_v6 = vadd.f32 %v1954_v3, %v1953_v0  ;;  %v1227_v7 = vadd.f32 %v1952_v62, %v2645_v63  ;;  %v2028_v9 = vpop.f32.mrb[34].mxu1 }
 0x146   : > { %v1326_v11 = vpop.f32.mrb[35].mxu1 }
 0x147   : > { %v1324_v10 = vadd.f32 %v1323_v8, %v1227_v7  ;;  %v1230_v50 = vadd.f32 %v1955_v6, %v2647_v2 }
 0x149   : > { %v1327_v12 = vadd.f32 %v1326_v11, %v1230_v50  ;;  %v1956_v13 = vpop.f32.mrb[36].mxu0  ;;  %v1386_v16 = vmax.f32 %v1324_v10, 0.0 }
 0x14a   : > { %v1957_v14 = vpop.f32.mrb[37].mxu0 }
 0x14b   : > { %v1387_v17 = vmax.f32 %v1327_v12, 0.0  ;;  %v1958_v19 = vadd.f32 %v1957_v14, %v1956_v13  ;;  %v1959_v21 = vpop.f32.mrb[38].mxu0  ;;  %v2031_v24 = vpop.f32.mrb[36].mxu1 }
 0x14c   : > { %v1960_v22 = vpop.f32.mrb[39].mxu0  ;;  %v1339_v63 = vpop.f32.mrb[37].mxu1 }
 0x14d   : > { %v1402_v25 = vpack.c.bf16 %v1387_v17, %v1386_v16  ;;  %v1235_v26 = vadd.f32 %v1958_v19, %v2651_v15  ;;  %v1961_v27 = vadd.f32 %v1960_v22, %v1959_v21  ;;  %v2032_v28 = vpop.f32.mrb[38].mxu1 }
 0x14e   : > { %v1342_v2 = vpop.f32.mrb[39].mxu1 }
 0x14f   : > { %v1332_v29 = vadd.f32 %v2027_v4, %v1235_v26  ;;  %v1238_v30 = vadd.f32 %v1961_v27, %v2653_v18  ;;  %2057 = vmatprep.mubr.bf16.mxu1 %v1402_v25 }
 0x151   : > { %v1335_v32 = vadd.f32 %v2028_v9, %v1238_v30  ;;  %v1962_v33 = vpop.f32.mrb[40].mxu0  ;;  %v1388_v36 = vmax.f32 %v1332_v29, 0.0 }
 0x152   : > { %v1963_v35 = vpop.f32.mrb[41].mxu0 }
 0x153   : > { %v1389_v37 = vmax.f32 %v1335_v32, 0.0  ;;  %v1964_v39 = vadd.f32 %v1963_v35, %v1962_v33  ;;  %v1965_v40 = vpop.f32.mrb[42].mxu0  ;;  %v2035_v43 = vpop.f32.mrb[40].mxu1 }
 0x154   : > { %v1966_v42 = vpop.f32.mrb[43].mxu0  ;;  %v1355_v46 = vpop.f32.mrb[41].mxu1 }
 0x155   : > { %v1403_v44 = vpack.c.bf16 %v1389_v37, %v1388_v36  ;;  %v1967_v45 = vadd.f32 %v1966_v42, %v1965_v40  ;;  %v1243_v15 = vadd.f32 %v1964_v39, %v2657_v31  ;;  %v2036_v48 = vpop.f32.mrb[42].mxu1 }
 0x156   : > { %v1358_v52 = vpop.f32.mrb[43].mxu1 }
 0x157   : > { %v1340_v49 = vadd.f32 %v1339_v63, %v1243_v15  ;;  %2058 = vmatmul.mubr.bf16.vlgmr.msra.gmra.mrb[48].mxu1 %v1403_v44  ;;  %v1246_v18 = vadd.f32 %v1967_v45, %v2659_v34 }
 0x159   : > { %v1343_v53 = vadd.f32 %v1342_v2, %v1246_v18  ;;  %v1968_v54 = vpop.f32.mrb[44].mxu0  ;;  %v1390_v56 = vmax.f32 %v1340_v49, 0.0 }
 0x15a   : > { %v1969_v55 = vpop.f32.mrb[45].mxu0 }
 0x15b   : > { %v1391_v58 = vmax.f32 %v1343_v53, 0.0  ;;  %v1970_v59 = vadd.f32 %v1969_v55, %v1968_v54  ;;  %v1971_v61 = vpop.f32.mrb[46].mxu0  ;;  %v2697_v0 = vpop.f32.mrb[44].mxu1 }
 0x15c   : > { %v1972_v62 = vpop.f32.mrb[47].mxu0  ;;  %v1371_v6 = vpop.f32.mrb[45].mxu1 }
 0x15d   : > { %v1404_v3 = vpack.c.bf16 %v1391_v58, %v1390_v56  ;;  %v1251_v31 = vadd.f32 %v1970_v59, %v2663_v47  ;;  %v1973_v4 = vadd.f32 %v1972_v62, %v1971_v61  ;;  %v2040_v7 = vpop.f32.mrb[46].mxu1 }
 0x15e   : > { %v1374_v9 = vpop.f32.mrb[47].mxu1 }
 0x15f   : > { %v1348_v8 = vadd.f32 %v2031_v24, %v1251_v31  ;;  %v1254_v34 = vadd.f32 %v1973_v4, %v2665_v51  ;;  %2061 = vmatprep.mubr.bf16.mxu1 %v1404_v3 }
 0x161   : > { %v1351_v10 = vadd.f32 %v2032_v28, %v1254_v34  ;;  %v1974_v50 = vpop.f32.mrb[48].mxu0  ;;  %v1392_v12 = vmax.f32 %v1348_v8, 0.0 }
 0x162   : > { %v1975_v11 = vpop.f32.mrb[49].mxu0 }
 0x163   : > { %v1393_v13 = vmax.f32 %v1351_v10, 0.0  ;;  %v1976_v14 = vadd.f32 %v1975_v11, %v1974_v50  ;;  %v1977_v16 = vpop.f32.mrb[50].mxu0 }
 0x164   : > { %v1978_v17 = vpop.f32.mrb[51].mxu0 }
 0x165   : > { %v1979_v19 = vadd.f32 %v1978_v17, %v1977_v16  ;;  %v1259_v21 = vadd.f32 %v1976_v14, %v2669_v1  ;;  %v1405_v47 = vpack.c.bf16 %v1393_v13, %v1392_v12 }
 0x167   : > { %v1356_v22 = vadd.f32 %v1355_v46, %v1259_v21  ;;  %2062 = vmatmul.mubr.bf16.gmra.mrb[52].mxu1 %v1405_v47  ;;  %v1262_v24 = vadd.f32 %v1979_v19, %v2671_v5 }
 0x169   : > { %v1359_v25 = vadd.f32 %v1358_v52, %v1262_v24  ;;  %v1980_v51 = vpop.f32.mrb[52].mxu0  ;;  %v1394_v27 = vmax.f32 %v1356_v22, 0.0 }
 0x16a   : > { %v1981_v26 = vpop.f32.mrb[53].mxu0 }
 0x16b   : > { %v1395_v63 = vmax.f32 %v1359_v25, 0.0  ;;  %v1982_v28 = vadd.f32 %v1981_v26, %v1980_v51  ;;  %v1983_v29 = vpop.f32.mrb[54].mxu0 }
 0x16c   : > { %v1984_v30 = vpop.f32.mrb[55].mxu0 }
 0x16d   : > { %v1406_v2 = vpack.c.bf16 %v1395_v63, %v1394_v27  ;;  %v1267_v32 = vadd.f32 %v1982_v28, %v2675_v20  ;;  %v1985_v33 = vadd.f32 %v1984_v30, %v1983_v29 }
 0x16f   : > { %v1364_v35 = vadd.f32 %v2035_v43, %v1267_v32  ;;  %v1270_v1 = vadd.f32 %v1985_v33, %v2677_v23  ;;  %2065 = vmatprep.mubr.bf16.mxu1 %v1406_v2 }
 0x171   : > { %v1367_v36 = vadd.f32 %v2036_v48, %v1270_v1  ;;  %v1986_v37 = vpop.f32.mrb[56].mxu0  ;;  %v1396_v5 = vmax.f32 %v1364_v35, 0.0 }
 0x172   : > { %v1987_v39 = vpop.f32.mrb[57].mxu0 }
 0x173   : > { %v1397_v40 = vmax.f32 %v1367_v36, 0.0  ;;  %v1988_v42 = vadd.f32 %v1987_v39, %v1986_v37  ;;  %v1989_v44 = vpop.f32.mrb[58].mxu0 }
 0x174   : > { %v1990_v45 = vpop.f32.mrb[59].mxu0 }
 0x175   : > { %v1991_v15 = vadd.f32 %v1990_v45, %v1989_v44  ;;  %v1275_v46 = vadd.f32 %v1988_v42, %v2681_v38  ;;  %v1407_v49 = vpack.c.bf16 %v1397_v40, %v1396_v5 }
 0x177   : > { %v1372_v18 = vadd.f32 %v1371_v6, %v1275_v46  ;;  %2066 = vmatmul.mubr.bf16.gmra.mrb[56].mxu1 %v1407_v49  ;;  %v1278_v20 = vadd.f32 %v1991_v15, %v2683_v41  ;;  %v1791_v6 = vld [vmem:[%s2790_s4] ss:$0 sm:$0xff] }
 0x179   : > { %v1375_v43 = vadd.f32 %v1374_v9, %v1278_v20  ;;  %v1992_v52 = vpop.f32.mrb[60].mxu0  ;;  %v1398_v53 = vmax.f32 %v1372_v18, 0.0 }
 0x17a   : > { %v1993_v23 = vpop.f32.mrb[61].mxu0 }
 0x17b   : > { %v1399_v48 = vmax.f32 %v1375_v43, 0.0  ;;  %v1994_v54 = vadd.f32 %v1993_v23, %v1992_v52  ;;  %v1995_v55 = vpop.f32.mrb[62].mxu0 }
 0x17c   : > { %v1996_v56 = vpop.f32.mrb[63].mxu0 }
 0x17d   : > { %v1408_v58 = vpack.c.bf16 %v1399_v48, %v1398_v53  ;;  %v1283_v59 = vadd.f32 %v1994_v54, %v2687_v57  ;;  %v1997_v61 = vadd.f32 %v1996_v56, %v1995_v55 }
 0x17f   : > { %v1380_v38 = vadd.f32 %v2697_v0, %v1283_v59  ;;  %v1286_v62 = vadd.f32 %v1997_v61, %v2689_v60  ;;  %2069 = vmatprep.mubr.bf16.mxu1 %v1408_v58 }
 0x181   : > { %v1383_v41 = vadd.f32 %v2040_v7, %v1286_v62  ;;  %v1400_v3 = vmax.f32 %v1380_v38, 0.0 }
 0x183   : > { %v1401_v31 = vmax.f32 %v1383_v41, 0.0 }
 0x185   : > { %v1409_v4 = vpack.c.bf16 %v1401_v31, %v1400_v3 }
 0x187   : > { %2070 = vmatmul.mubr.bf16.gmra.mrb[60].mxu1 %v1409_v4 }
 0x22a   : > { %v2059_v8 = vpop.f32.mrb[48].mxu1 }
 0x22b   : > { %v1524_v57 = vadd.f32 %v2059_v8, %v1791_v6  ;;  %v1515_v34 = vpop.f32.mrb[49].mxu1 }
 0x22c   : > { %v1516_v9 = vadd.f32 %v1791_v6, %v1515_v34  ;;  %v2060_v0 = vpop.f32.mrb[50].mxu1 }
 0x22d   : > { %1580 = vst [vmem:[%s2716_s26 + $0x10] sm:$0xff] %v1524_v57  ;;  %v1527_v60 = vadd.f32 %v2060_v0, %v1791_v6  ;;  %v1518_v7 = vpop.f32.mrb[51].mxu1 }
 0x22e   : > { %1578 = vst [vmem:[%s2716_s26] sm:$0xff] %v1516_v9  ;;  %v1519_v10 = vadd.f32 %v1791_v6, %v1518_v7 }
 0x22f   : > { %1581 = vst [vmem:[%s2716_s26 + $0x18] sm:$0xff] %v1527_v60 }
 0x230   : > { %1579 = vst [vmem:[%s2716_s26 + $0x8] sm:$0xff] %v1519_v10 }
 0x23a   : > { %v2063_v50 = vpop.f32.mrb[52].mxu1 }
 0x23b   : > { %v1540_v11 = vadd.f32 %v2063_v50, %v1791_v6  ;;  %v1531_v12 = vpop.f32.mrb[53].mxu1 }
 0x23c   : > { %v1532_v13 = vadd.f32 %v1791_v6, %v1531_v12  ;;  %v2064_v14 = vpop.f32.mrb[54].mxu1 }
 0x23d   : > { %1584 = vst [vmem:[%s2716_s26 + $0x30] sm:$0xff] %v1540_v11  ;;  %v1543_v16 = vadd.f32 %v2064_v14, %v1791_v6  ;;  %v1534_v17 = vpop.f32.mrb[55].mxu1 }
 0x23e   : > { %1582 = vst [vmem:[%s2716_s26 + $0x20] sm:$0xff] %v1532_v13  ;;  %v1535_v19 = vadd.f32 %v1791_v6, %v1534_v17 }
 0x23f   : > { %1585 = vst [vmem:[%s2716_s26 + $0x38] sm:$0xff] %v1543_v16 }
 0x240   : > { %1583 = vst [vmem:[%s2716_s26 + $0x28] sm:$0xff] %v1535_v19 }
 0x24a   : > { %v2067_v21 = vpop.f32.mrb[56].mxu1 }
 0x24b   : > { %v1556_v47 = vadd.f32 %v2067_v21, %v1791_v6  ;;  %v1547_v22 = vpop.f32.mrb[57].mxu1 }
 0x24c   : > { %v1548_v24 = vadd.f32 %v1791_v6, %v1547_v22  ;;  %v2068_v25 = vpop.f32.mrb[58].mxu1 }
 0x24d   : > { %1588 = vst [vmem:[%s2716_s26 + $0x50] sm:$0xff] %v1556_v47  ;;  %v1559_v51 = vadd.f32 %v2068_v25, %v1791_v6  ;;  %v1550_v26 = vpop.f32.mrb[59].mxu1 }
 0x24e   : > { %1586 = vst [vmem:[%s2716_s26 + $0x40] sm:$0xff] %v1548_v24  ;;  %v1551_v27 = vadd.f32 %v1791_v6, %v1550_v26 }
 0x24f   : > { %1589 = vst [vmem:[%s2716_s26 + $0x58] sm:$0xff] %v1559_v51 }
 0x250   : > { %1587 = vst [vmem:[%s2716_s26 + $0x48] sm:$0xff] %v1551_v27 }
 0x25a   : > { %v2071_v63 = vpop.f32.mrb[60].mxu1 }
 0x25b   : > { %v1572_v28 = vadd.f32 %v2071_v63, %v1791_v6  ;;  %v1563_v29 = vpop.f32.mrb[61].mxu1 }
 0x25c   : > { %v1564_v30 = vadd.f32 %v1791_v6, %v1563_v29  ;;  %v2072_v2 = vpop.f32.mrb[62].mxu1 }
 0x25d   : > { %1592 = vst [vmem:[%s2716_s26 + $0x70] sm:$0xff] %v1572_v28  ;;  %v1575_v32 = vadd.f32 %v2072_v2, %v1791_v6  ;;  %v1566_v33 = vpop.f32.mrb[63].mxu1 }
 0x25e   : > { %1590 = vst [vmem:[%s2716_s26 + $0x60] sm:$0xff] %v1564_v30  ;;  %v1567_v35 = vadd.f32 %v1791_v6, %v1566_v33 }
 0x25f   : > { %1593 = vst [vmem:[%s2716_s26 + $0x78] sm:$0xff] %v1575_v32 }
 0x260   : > { %1591 = vst [vmem:[%s2716_s26 + $0x68] sm:$0xff] %v1567_v35 }
 0x261   : > { %2265 = shalt.err (!%p2262_p3)
}
 0x262   : > { %s2266_s15 = scalar_lea.hbm %s2736_s10, 2048  ;;  %s2270_s17 = scalar_lea.hbm %s2791_s5, 4096 }
 0x263   : > { %p2267_p4 = scmp.ne.s32.totalorder %s2736_s10, %s2266_s15  ;;  %p2271_p9 = scmp.lt.u32.totalorder %s2736_s10, %s2791_s5 }
 0x264   : > { %p2272_p10 = scmp.lt.u32.totalorder %s2270_s17, %s2266_s15  ;;  %p2274_p12 = scmp.lt.u32.totalorder %s2266_s15, %s2736_s10 }
 0x265   : > { %p2268_p7 = pnand %p2267_p4, %p2387_p5 }
 0x266   : > { %p2273_p11 = por %p2272_p10, %p2271_p9 }
 0x267   : > { %p2269_p8 = pneg %p2268_p7 }
 0x268   : > { %p2275_p13 = por %p2274_p12, %p2273_p11 }
 0x26a   : > { %p2276_p0 = pnand %p2275_p13, %p2269_p8 }
 0x26c   : > { %2279 = shalt.err (!%p2276_p0)
}
 0x26d   : > { %s2317_s26 = smov 128   ;;  %s2318_s6 = smov 8  }
 0x26e   : > { %2074 = dma.vmem_to_hbm [thread:$0]  (%p2387_p5), %s2738_s7, 2048, %s2736_s10, %s2745_s22, %s2317_s26, %s2317_s26, %s2318_s6  }
 0x26f PF: > { %p2080_p1 = scmp.ge.s32.totalorder %s2314_s21, 2  ;;  %s1623_s8 = sand.u32 1, %s2302_s18  }
 0x270   : > { %s1624_s9 = scalar_lea.sflag [#allocation3], %s1623_s8 }
 0x271   : > { %p2077_p2 = pnand %p2080_p1, %p2391_p6 }
 0x273   : > { %2297 = dma.done.wait (!%p2077_p2), %s1624_s9, 2048  }
 0x274   : > { %2299 = vsyncadd (!%p2077_p2), %s1624_s9, 4294965248  ;;  %p15_p3 = scmp.ge.s32.totalorder %s2374_s24, 4   ;;  %s2794_s18 = smov %s2306_s19 }
 0x275   : > { %s2795_s19 = smov %s2310_s20  ;;  %s2796_s20 = smov %s2385_s27 }
 0x276   : > { %s2797_s21 = smov %s2374_s24  ;;  %17 = sbr.rel (!%p15_p3) target bundleno = 3 (0x3), region = 75 }
 0x27d   :  { %1629 = vsyncpa [#allocation3], 1 }
 0x27e   :  { %1631 = vsyncpa [#allocation3 + $0x1], 1 }

</bundles_post_ra>
